<compile_context>
chip_gen: v6e
topology: v6e:2x2x1
jax: 0.10.0
libtpu: 0.0.40
codegen_flags: <defaults>
</compile_context>

<pallas_src>
import jax
import jax.numpy as jnp
from jax.experimental import pallas as pl
from jax.experimental.pallas import tpu as pltpu


def dqn_kernel(x_ref, w1_ref, b1_ref, w2_ref, b2_ref, w3_ref, b3_ref, o_ref):
    f32 = jnp.float32

    # ---- layer 1 on the MXU (idle unit; K=4 padding waste is irrelevant here).
    h1 = jnp.dot(x_ref[...].astype(w1_ref.dtype), w1_ref[...],
                 preferred_element_type=f32)
    h1 = jnp.maximum(h1 + b1_ref[...].astype(f32), 0.0)

    # ---- layer 2 on the MXU, f32 accumulation; bias + ReLU stay in f32
    #      (v5e VPU has no bf16).
    h2 = jnp.dot(h1.astype(w2_ref.dtype), w2_ref[...],
                 preferred_element_type=f32)
    h2 = jnp.maximum(h2 + b2_ref[...].astype(f32), 0.0)

    # ---- layer 3 on the MXU; compact (tb, out_dim) store.
    out = jnp.dot(h2.astype(w3_ref.dtype), w3_ref[...],
                  preferred_element_type=f32)
    o_ref[...] = (out + b3_ref[...].astype(f32)).astype(o_ref.dtype)


def dqn_forward(x, params, *, block_b=4096):
    """Q-values for a batch of observations. params = (w1, b1, w2, b2, w3, b3)."""
    w1, b1, w2, b2, w3, b3 = params
    B, in_dim = x.shape
    h1_dim = w1.shape[1]
    h2_dim = w2.shape[1]
    out_dim = w3.shape[1]
    out_dtype = x.dtype  # bf16 inputs -> bf16 writeback (accumulation stays f32).

    # Batch tile: multiple of 8 sublanes, capped at block_b; pad B up if needed.
    tb = max(8, min(block_b, pl.cdiv(B, 8) * 8))
    tb = (tb // 8) * 8
    b_pad = pl.cdiv(B, tb) * tb
    xp = x if b_pad == B else jnp.pad(x, ((0, b_pad - B), (0, 0)))

    grid = (b_pad // tb,)
    resident = lambda a: pl.BlockSpec(a.shape, lambda i: (0, 0))  # stays in VMEM

    flops = 2 * b_pad * (in_dim * h1_dim + h1_dim * h2_dim + h2_dim * out_dim)
    bytes_accessed = (
        int(xp.size) * xp.dtype.itemsize
        + b_pad * out_dim * jnp.dtype(out_dtype).itemsize
        + sum(int(a.size) * a.dtype.itemsize for a in (w1, b1, w2, b2, w3, b3))
    )

    out = pl.pallas_call(
        dqn_kernel,
        out_shape=jax.ShapeDtypeStruct((b_pad, out_dim), out_dtype),
        grid=grid,
        in_specs=[
            pl.BlockSpec((tb, in_dim), lambda i: (i, 0)),   # x: tiled over batch
            resident(w1), resident(b1),
            resident(w2), resident(b2),
            resident(w3), resident(b3),
        ],
        out_specs=pl.BlockSpec((tb, out_dim), lambda i: (i, 0)),
        compiler_params=pltpu.CompilerParams(
            dimension_semantics=("parallel",),               # shard batch across TCs
        ),
        cost_estimate=pl.CostEstimate(
            flops=flops, transcendentals=0, bytes_accessed=bytes_accessed),
    )(xp, w1, b1, w2, b2, w3, b3)

    return out if b_pad == B else out[:B]


def init_linear_params(key, in_features, out_features, dtype=jnp.float32):
    # Mimic PyTorch nn.Linear default init: U(-1/sqrt(fan_in), 1/sqrt(fan_in)).
    kw, kb = jax.random.split(key)
    bound = 1.0 / jnp.sqrt(jnp.float32(in_features))
    # Stored as (in, out): already transposed relative to PyTorch's (out, in).
    w = jax.random.uniform(kw, (in_features, out_features), jnp.float32, -bound, bound)
    b = jax.random.uniform(kb, (1, out_features), jnp.float32, -bound, bound)
    return w.astype(dtype), b.astype(dtype)


if __name__ == "__main__":
    # CartPole-v1: observation dim 4, action count 2.
    input_size = 4
    output_size = 2
    batch = 8

    key = jax.random.PRNGKey(0)
    kx, k1, k2, k3 = jax.random.split(key, 4)

    x = jax.random.normal(kx, (batch, input_size), jnp.float32)
    w1, b1 = init_linear_params(k1, input_size, 64)
    w2, b2 = init_linear_params(k2, 64, 32)
    w3, b3 = init_linear_params(k3, 32, output_size)
    params = (w1, b1, w2, b2, w3, b3)
    # For v6e/v7x throughput at replay-buffer batch sizes, pass bf16 x/params;
    # accumulation stays f32 and the output writeback follows the input dtype.

    q_values = dqn_forward(x, params)
    q_values = jax.block_until_ready(q_values)

    # Pure-JAX reference for a correctness sanity check.
    ref = jnp.maximum(x @ w1 + b1, 0.0)
    ref = jnp.maximum(ref @ w2 + b2, 0.0)
    ref = ref @ w3 + b3
    assert q_values.shape == (batch, output_size)
    assert jnp.allclose(q_values, ref, atol=1e-5, rtol=1e-5)

    print("KERNEL_OK")
</pallas_src>

<mosaic_0001>
module attributes {stable_mosaic.version = 11 : i64} {
  func.func @dqn_kernel(%arg0: i32, %arg1: memref<8x4xf32, #tpu.memory_space<vmem>>, %arg2: memref<4x64xf32, #tpu.memory_space<vmem>>, %arg3: memref<1x64xf32, #tpu.memory_space<vmem>>, %arg4: memref<64x32xf32, #tpu.memory_space<vmem>>, %arg5: memref<1x32xf32, #tpu.memory_space<vmem>>, %arg6: memref<32x2xf32, #tpu.memory_space<vmem>>, %arg7: memref<1x2xf32, #tpu.memory_space<vmem>>, %arg8: memref<8x2xf32, #tpu.memory_space<vmem>>) attributes {dimension_semantics = [#tpu.dimension_semantics<parallel>], iteration_bounds = array<i64: 1>, scalar_prefetch = 0 : i64, scratch_operands = 0 : i64, tpu.core_type = #tpu.core_type<tc>, window_params = [{transform_indices = @transform_0, window_bounds = array<i64: 8, 4>}, {pipeline_mode = #tpu.pipeline_mode<synchronous>, transform_indices = @transform_1, window_bounds = array<i64: 4, 64>}, {pipeline_mode = #tpu.pipeline_mode<synchronous>, transform_indices = @transform_2, window_bounds = array<i64: 1, 64>}, {pipeline_mode = #tpu.pipeline_mode<synchronous>, transform_indices = @transform_3, window_bounds = array<i64: 64, 32>}, {pipeline_mode = #tpu.pipeline_mode<synchronous>, transform_indices = @transform_4, window_bounds = array<i64: 1, 32>}, {pipeline_mode = #tpu.pipeline_mode<synchronous>, transform_indices = @transform_5, window_bounds = array<i64: 32, 2>}, {pipeline_mode = #tpu.pipeline_mode<synchronous>, transform_indices = @transform_6, window_bounds = array<i64: 1, 2>}, {transform_indices = @transform_7, window_bounds = array<i64: 8, 2>}]} {
    %c0 = arith.constant 0 : index
    %c0_0 = arith.constant 0 : index
    %0 = vector.load %arg1[%c0, %c0_0] : memref<8x4xf32, #tpu.memory_space<vmem>>, vector<8x4xf32>
    %c0_1 = arith.constant 0 : index
    %c0_2 = arith.constant 0 : index
    %1 = vector.load %arg2[%c0_1, %c0_2] : memref<4x64xf32, #tpu.memory_space<vmem>>, vector<4x64xf32>
    %cst = arith.constant dense<0.000000e+00> : vector<8x64xf32>
    %2 = tpu.matmul %0, %1, %cst {dimension_numbers = #tpu.dot_dimension_numbers<[1], [0], [0], [1], [0, 0, 1, 1], [], []>} : vector<8x4xf32>, vector<4x64xf32>, vector<8x64xf32> -> vector<8x64xf32>
    %c0_3 = arith.constant 0 : index
    %c0_4 = arith.constant 0 : index
    %3 = vector.load %arg3[%c0_3, %c0_4] : memref<1x64xf32, #tpu.memory_space<vmem>>, vector<1x64xf32>
    %4 = vector.broadcast %3 : vector<1x64xf32> to vector<8x64xf32>
    %5 = arith.addf %2, %4 : vector<8x64xf32>
    %cst_5 = arith.constant 0.000000e+00 : f32
    %6 = vector.broadcast %cst_5 : f32 to vector<8x64xf32>
    %7 = arith.maximumf %5, %6 : vector<8x64xf32>
    %c0_6 = arith.constant 0 : index
    %c0_7 = arith.constant 0 : index
    %8 = vector.load %arg4[%c0_6, %c0_7] : memref<64x32xf32, #tpu.memory_space<vmem>>, vector<64x32xf32>
    %cst_8 = arith.constant dense<0.000000e+00> : vector<8x32xf32>
    %9 = tpu.matmul %7, %8, %cst_8 {dimension_numbers = #tpu.dot_dimension_numbers<[1], [0], [0], [1], [0, 0, 1, 1], [], []>} : vector<8x64xf32>, vector<64x32xf32>, vector<8x32xf32> -> vector<8x32xf32>
    %c0_9 = arith.constant 0 : index
    %c0_10 = arith.constant 0 : index
    %10 = vector.load %arg5[%c0_9, %c0_10] : memref<1x32xf32, #tpu.memory_space<vmem>>, vector<1x32xf32>
    %11 = vector.broadcast %10 : vector<1x32xf32> to vector<8x32xf32>
    %12 = arith.addf %9, %11 : vector<8x32xf32>
    %cst_11 = arith.constant 0.000000e+00 : f32
    %13 = vector.broadcast %cst_11 : f32 to vector<8x32xf32>
    %14 = arith.maximumf %12, %13 : vector<8x32xf32>
    %c0_12 = arith.constant 0 : index
    %c0_13 = arith.constant 0 : index
    %15 = vector.load %arg6[%c0_12, %c0_13] : memref<32x2xf32, #tpu.memory_space<vmem>>, vector<32x2xf32>
    %cst_14 = arith.constant dense<0.000000e+00> : vector<8x2xf32>
    %16 = tpu.matmul %14, %15, %cst_14 {dimension_numbers = #tpu.dot_dimension_numbers<[1], [0], [0], [1], [0, 0, 1, 1], [], []>} : vector<8x32xf32>, vector<32x2xf32>, vector<8x2xf32> -> vector<8x2xf32>
    %c0_15 = arith.constant 0 : index
    %c0_16 = arith.constant 0 : index
    %17 = vector.load %arg7[%c0_15, %c0_16] : memref<1x2xf32, #tpu.memory_space<vmem>>, vector<1x2xf32>
    %18 = vector.broadcast %17 : vector<1x2xf32> to vector<8x2xf32>
    %19 = arith.addf %16, %18 : vector<8x2xf32>
    %c0_17 = arith.constant 0 : index
    %c0_18 = arith.constant 0 : index
    %20 = vector.load %arg8[%c0_17, %c0_18] : memref<8x2xf32, #tpu.memory_space<vmem>>, vector<8x2xf32>
    tpu.vector_store %arg8[%c0_17, %c0_18], %19 {strides = array<i32>} : memref<8x2xf32, #tpu.memory_space<vmem>>, vector<8x2xf32>,
    return
  }
  func.func @transform_0(%arg0: i32) -> (i32, i32) {
    %c0_i32 = arith.constant 0 : i32
    %c0_i32_0 = arith.constant 0 : i32
    return %arg0, %c0_i32 : i32, i32
  }
  func.func @transform_1(%arg0: i32) -> (i32, i32) {
    %c0_i32 = arith.constant 0 : i32
    %c0_i32_0 = arith.constant 0 : i32
    %c0_i32_1 = arith.constant 0 : i32
    return %c0_i32, %c0_i32_0 : i32, i32
  }
  func.func @transform_2(%arg0: i32) -> (i32, i32) {
    %c0_i32 = arith.constant 0 : i32
    %c0_i32_0 = arith.constant 0 : i32
    %c0_i32_1 = arith.constant 0 : i32
    return %c0_i32, %c0_i32_0 : i32, i32
  }
  func.func @transform_3(%arg0: i32) -> (i32, i32) {
    %c0_i32 = arith.constant 0 : i32
    %c0_i32_0 = arith.constant 0 : i32
    %c0_i32_1 = arith.constant 0 : i32
    return %c0_i32, %c0_i32_0 : i32, i32
  }
  func.func @transform_4(%arg0: i32) -> (i32, i32) {
    %c0_i32 = arith.constant 0 : i32
    %c0_i32_0 = arith.constant 0 : i32
    %c0_i32_1 = arith.constant 0 : i32
    return %c0_i32, %c0_i32_0 : i32, i32
  }
  func.func @transform_5(%arg0: i32) -> (i32, i32) {
    %c0_i32 = arith.constant 0 : i32
    %c0_i32_0 = arith.constant 0 : i32
    %c0_i32_1 = arith.constant 0 : i32
    return %c0_i32, %c0_i32_0 : i32, i32
  }
  func.func @transform_6(%arg0: i32) -> (i32, i32) {
    %c0_i32 = arith.constant 0 : i32
    %c0_i32_0 = arith.constant 0 : i32
    %c0_i32_1 = arith.constant 0 : i32
    return %c0_i32, %c0_i32_0 : i32, i32
  }
  func.func @transform_7(%arg0: i32) -> (i32, i32) {
    %c0_i32 = arith.constant 0 : i32
    %c0_i32_0 = arith.constant 0 : i32
    return %arg0, %c0_i32 : i32, i32
  }
}

</mosaic_0001>

<bundles_post_ra>
// kernel: tpu_custom_call.1
= control target key start
LH: loop header
LB: loop body
LE: loop exit
PB: predicated region body
PF: predicated region fallthrough
CT: control target
= control target key end

     0   :  { %vm39_vm0 = vcmask 1043456   ;;  %vm35_vm1 = vcmask 31744   ;;  %v355_v0 = vmov 0.0   ;;  %vm356_vm2 = vmmov 0   ;;  %s454_s1 = inlined_call_operand.vmem [shape: f32[4,64], index: 1, kind: input, shape index: {}]   ;;  %s455_s0 = inlined_call_operand.vmem [shape: f32[8,4], index: 0, kind: input, shape index: {}]   ;;  %s456_s3 = inlined_call_operand.vmem [shape: f32[64,32], index: 3, kind: input, shape index: {}]   ;;  %s457_s5 = inlined_call_operand.vmem [shape: f32[32,2], index: 5, kind: input, shape index: {}]   ;;  %s458_s2 = inlined_call_operand.vmem [shape: f32[1,64], index: 2, kind: input, shape index: {}]   ;;  %s459_s4 = inlined_call_operand.vmem [shape: f32[1,32], index: 4, kind: input, shape index: {}]   ;;  %s460_s6 = inlined_call_operand.vmem [shape: f32[1,2], index: 6, kind: input, shape index: {}]   ;;  %s461_s7 = inlined_call_operand.vmem [shape: f32[8,2], index: 7, kind: output, shape index: {}]  }
   0x1   :  { %318 = vmatprep.subr.mxu0 %v355_v0  ;;  %v27_v1 = vld [vmem:[%s454_s1] sm:$0xf]  ;;  %320 = vmatprep.mubr.msk.f32.mxu0 %vm356_vm2, %v355_v0  ;;  %v121_v3 = vld [vmem:[%s456_s3 + $0x38] sm:$0xff]  ;;  %v120_v4 = vld [vmem:[%s456_s3 + $0x30] sm:$0xff]  ;;  %vm129_vm3 = vcmask 523264   ;;  %vm215_vm4 = vcmask 261120  }
   0x2   :  { %v26_v2 = vld [vmem:[%s455_s0] sm:$0xff]  ;;  %319 = vmatpush3.msk.msra.mxu0 %vm39_vm0, %v27_v1  ;;  %323 = vmatprep.subr.mxu1 %v355_v0  ;;  %v119_v5 = vld [vmem:[%s456_s3 + $0x28] sm:$0xff]  ;;  %v117_v7 = vld [vmem:[%s456_s3 + $0x18] sm:$0xff]  ;;  %vm289_vm5 = vcmask 15360  }
   0x3   :  { %321 = vmatmul.mubr.msk.f32.vlgmr.msra.gmra.mxu0 %vm35_vm1, %v26_v2  ;;  %324 = vmatpush3.msra.mxu1 %v121_v3  ;;  %v118_v6 = vld [vmem:[%s456_s3 + $0x20] sm:$0xff]  ;;  %v116_v8 = vld [vmem:[%s456_s3 + $0x10] sm:$0xff]  ;;  %v115_v9 = vld [vmem:[%s456_s3 + $0x8] sm:$0xff] }
   0x4   :  { %325 = vmatprep.subr.mxu1 %v355_v0  ;;  %339 = vmatprep.mubr.msk.f32.mxu1 %vm356_vm2, %v355_v0  ;;  %v114_v10 = vld [vmem:[%s456_s3] sm:$0xff]  ;;  %v207_v11 = vld [vmem:[%s457_s5 + $0x18] sm:$0xff]  ;;  %v206_v17 = vld [vmem:[%s457_s5 + $0x10] sm:$0xff] }
   0x5   :  { %326 = vmatpush3.msra.mxu1 %v120_v4  ;;  %342 = vmatprep.subr.mxu0 %v355_v0  ;;  %v295_v12 = vld [vmem:[%s458_s2] ss:$0 sm:$0xff]  ;;  %v205_v18 = vld [vmem:[%s457_s5 + $0x8] sm:$0xff] }
   0x6   :  { %327 = vmatprep.subr.mxu1 %v355_v0  ;;  %350 = vmatprep.mubr.msk.f32.mxu0 %vm356_vm2, %v355_v0  ;;  %v204_v19 = vld [vmem:[%s457_s5] sm:$0xff] }
   0x7   :  { %328 = vmatpush3.msra.mxu1 %v119_v5  ;;  %343 = vmatpush3.msra.mxu0 %v207_v11  ;;  %v298_v20 = vld [vmem:[%s459_s4] ss:$0 sm:$0xff] }
   0x8   :  { %329 = vmatprep.subr.mxu1 %v355_v0  ;;  %344 = vmatprep.subr.mxu0 %v355_v0  ;;  %v300_v25 = vld [vmem:[%s460_s6] ss:$0 sm:$0xff] }
   0x9   :  { %330 = vmatpush3.msra.mxu1 %v118_v6  ;;  %345 = vmatpush3.msra.mxu0 %v206_v17 }
   0xa   :  { %331 = vmatprep.subr.mxu1 %v355_v0  ;;  %346 = vmatprep.subr.mxu0 %v355_v0 }
   0xb   :  { %332 = vmatpush3.msra.mxu1 %v117_v7  ;;  %347 = vmatpush3.msra.mxu0 %v205_v18 }
   0xc   :  { %333 = vmatprep.subr.mxu1 %v355_v0  ;;  %348 = vmatprep.subr.mxu0 %v355_v0 }
   0xd   :  { %334 = vmatpush3.msra.mxu1 %v116_v8  ;;  %349 = vmatpush3.msra.mxu0 %v204_v19 }
   0xe   :  { %335 = vmatprep.subr.mxu1 %v355_v0 }
   0xf   :  { %336 = vmatpush3.msra.mxu1 %v115_v9 }
  0x10   :  { %337 = vmatprep.subr.mxu1 %v355_v0 }
  0x11   :  { %338 = vmatpush3.msra.mxu1 %v114_v10 }
  0xc3   :  { %v109_v13 = vpop.f32.mrf.mxu0 }
  0xc4   :  { %v110_v14 = vadd.f32 %v295_v12, %v109_v13 }
  0xc5   :  { %v322_v15 = vpop.f32.mrf.mxu0 }
  0xc6   :  { %v113_v16 = vmax.f32 %v110_v14, 0.0 }
  0xc8   :  { %340 = vmatmul.mubr.msk.f32.vlgmr.msra.gmra.mxu1 %vm129_vm3, %v113_v16 }
 0x188   :  { %v199_v21 = vpop.f32.mrf.mxu1 }
 0x189   :  { %v200_v22 = vadd.f32 %v298_v20, %v199_v21 }
 0x18a   :  { %v341_v23 = vpop.f32.mrf.mxu1 }
 0x18b   :  { %v203_v24 = vmax.f32 %v200_v22, 0.0 }
 0x18d   :  { %351 = vmatmul.mubr.msk.f32.vlgmr.msra.gmra.mxu0 %vm215_vm4, %v203_v24 }
 0x24d   :  { %v285_v26 = vpop.f32.mrf.mxu0 }
 0x24e   :  { %v286_v27 = vadd.f32 %v300_v25, %v285_v26 }
 0x24f   :  { %v352_v28 = vpop.f32.mrf.mxu0 }
 0x250   :  { %290 = vst.msk [vmem:[%s461_s7] sm:$0xff] %vm289_vm5, %v286_v27 }

</bundles_post_ra>
